<compile_context>
chip_gen: v5e
topology: v5e:2x2
jax: 0.10.0
libtpu: 0.0.40
codegen_flags: <defaults>
</compile_context>

<pallas_src>
import functools

import jax
import jax.numpy as jnp
from jax import lax
from jax.experimental import pallas as pl
from jax.experimental.pallas import tpu as pltpu

_ROWS_PER_PACK = 128  # original rows packed into one lane-dense super-row


def _round_up(x, m):
    return ((x + m - 1) // m) * m


def _device_defaults():
    """Per-generation tiling / VMEM / split defaults (review items 3-5)."""
    try:
        kind = jax.devices()[0].device_kind.lower()
    except Exception:  # no device info -> conservative defaults
        kind = ""
    if "v7" in kind:
        # 64 MiB physical VMEM, 3.2 TB/s HBM, 2 TensorCores.
        return dict(tile_m=4096, num_splits=2, vmem=48 * 1024 * 1024, buffers=3)
    if "v6" in kind:
        # 128 MiB physical VMEM -> large tiles amortize per-step overhead.
        return dict(tile_m=8192, num_splits=1, vmem=96 * 1024 * 1024, buffers=2)
    if "v5" in kind:
        return dict(tile_m=4096, num_splits=1, vmem=64 * 1024 * 1024, buffers=2)
    return dict(tile_m=2048, num_splits=1, vmem=48 * 1024 * 1024, buffers=2)


def _plan(r_arr, tile_cfg, num_splits):
    """Choose (num_splits, tile_m, blocks_per_split, blocks_total).

    Guarantees: tile_m is a multiple of 8 and tile_m <= r_arr (so a block
    never exceeds the array along sublanes; partial *last* blocks are fine
    and masked in-kernel).  Requires r_arr >= 8.
    """
    ns = num_splits if (num_splits > 1 and r_arr >= 8 * num_splits) else 1
    max_tile = (r_arr // 8) * 8
    per_split = pl.cdiv(r_arr, ns)
    tile = max(8, min(int(tile_cfg), _round_up(per_split, 8), max_tile))
    blocks_total = pl.cdiv(r_arr, tile)
    bps = pl.cdiv(blocks_total, ns)
    return ns, tile, bps, blocks_total


def _focal_loss_kernel(pred_ref, true_ref, out_ref, *, gamma, tile_m,
                       blocks_per_split, valid_rows, packed_c):
    i = pl.program_id(0)
    j = pl.program_id(1)

    # out block index is constant along grid axis 1 -> resident accumulator.
    @pl.when(j == 0)
    def _init():
        out_ref[...] = jnp.zeros_like(out_ref)

    p = pred_ref[...].astype(jnp.float32)      # (tile_m, packed_c)
    t = true_ref[...].astype(jnp.float32)      # (tile_m, packed_c)

    # Exact module semantics: ce = -y_true * log(y_pred).  (No eps clamp --
    # matches torch / the pure-JAX reference; softmax inputs never hit log(0).)
    ce = -t * jnp.log(p)
    one_minus = 1.0 - p
    if float(gamma).is_integer():              # VPU multiplies; EUP stays free for log
        factor = lax.integer_pow(one_minus, int(gamma))
    else:
        # TODO(synk): square-and-multiply for rational gamma to keep the EUP
        # at one transcendental/element on v7x.
        factor = one_minus ** jnp.float32(gamma)

    contrib = factor * ce                      # may be NaN/Inf in garbage rows

    # Mask packed rows beyond the valid count: covers the partial last block
    # (undefined VMEM padding) and duplicated clamped blocks on uneven splits.
    block_idx = i * blocks_per_split + j
    row0 = block_idx * tile_m
    row_ids = row0 + lax.broadcasted_iota(jnp.int32, (tile_m, 1), 0)
    contrib = jnp.where(row_ids < valid_rows, contrib, 0.0)

    # Fold sublane groups (tile_m, C') -> (8, C'): leading-dim reshape is a
    # layout no-op and the sum is pure vreg adds (no XLU).  Keeps the resident
    # accumulator and the HBM writeback tiny.
    folded = jnp.sum(contrib.reshape(tile_m // 8, 8, packed_c), axis=0)
    out_ref[...] += folded


def focal_loss(output, target, alpha=(0.25, 0.25, 0.25), gamma=2,
               tile_m=None, num_splits=None, vmem_limit_bytes=None,
               input_buffers=None):
    """Pallas implementation of FocalLoss.forward.

    output, target: float arrays of shape (..., C) with C == len(alpha).
    Returns a scalar float32 loss (mean over all leading positions).
    """
    c = len(alpha)
    assert output.shape == target.shape
    assert output.shape[-1] == c, "last dim must equal len(alpha)"

    cfg = _device_defaults()
    tile_m = cfg["tile_m"] if tile_m is None else int(tile_m)
    num_splits = cfg["num_splits"] if num_splits is None else int(num_splits)
    vmem_limit_bytes = cfg["vmem"] if vmem_limit_bytes is None else int(vmem_limit_bytes)
    input_buffers = cfg["buffers"] if input_buffers is None else int(input_buffers)
    tile_m = max(8, _round_up(tile_m, 8))

    y_pred = output.reshape(-1, c)
    y_true = target.reshape(-1, c)
    n = y_pred.shape[0]

    packed_c = c * _ROWS_PER_PACK              # 384 for C=3 (lane-dense)
    valid_rows = pl.cdiv(n, _ROWS_PER_PACK)    # packed rows holding real data

    if n % _ROWS_PER_PACK == 0 and valid_rows >= 8:
        # Fast path: free row-major reshape, zero extra HBM traffic (no pad).
        r_arr = valid_rows
    else:
        # Ragged N: pad only to the next 128-row boundary (>= 8 packed rows).
        # Pad values (pred=1, true=0) contribute exactly zero inside the last
        # partially-valid packed row; fully-padded rows are masked in-kernel.
        r_arr = max(valid_rows, 8)
        pad = r_arr * _ROWS_PER_PACK - n
        y_pred = jnp.pad(y_pred, ((0, pad), (0, 0)), constant_values=1.0)
        y_true = jnp.pad(y_true, ((0, pad), (0, 0)), constant_values=0.0)

    # Free row-major reshape to the lane-dense packed layout.
    pred2 = y_pred.reshape(r_arr, packed_c)
    true2 = y_true.reshape(r_arr, packed_c)

    ns, tile, bps, blocks_total = _plan(r_arr, tile_m, num_splits)
    last_block = blocks_total - 1

    if ns * bps == blocks_total:
        def in_map(i, j):
            return (i * bps + j, 0)
    else:
        # Uneven split: clamp the block index so DMAs stay in-bounds; the
        # duplicated block is fully masked in-kernel (row0 >= valid_rows).
        def in_map(i, j):
            return (jnp.minimum(i * bps + j, last_block), 0)

    kernel = functools.partial(
        _focal_loss_kernel, gamma=gamma, tile_m=tile, blocks_per_split=bps,
        valid_rows=valid_rows, packed_c=packed_c)

    def make_in_spec():
        kwargs = {}
        if input_buffers > 2 and bps > 2:      # deeper buffering (v7x) only
            kwargs["pipeline_mode"] = pl.Buffered(int(input_buffers))
        return pl.BlockSpec((tile, packed_c), in_map, **kwargs)

    out = pl.pallas_call(
        kernel,
        out_shape=jax.ShapeDtypeStruct((ns * 8, packed_c), jnp.float32),
        grid_spec=pltpu.PrefetchScalarGridSpec(
            num_scalar_prefetch=0,
            grid=(ns, bps),
            in_specs=[make_in_spec(), make_in_spec()],
            # One small resident (8, packed_c) accumulator block per split.
            out_specs=pl.BlockSpec((8, packed_c), lambda i, j: (i, 0)),
        ),
        compiler_params=pltpu.CompilerParams(
            dimension_semantics=("parallel", "arbitrary"),
            vmem_limit_bytes=vmem_limit_bytes,
        ),
    )(pred2, true2)

    # Tiny epilogue in XLA: fold lanes back to classes, apply alpha, mean.
    alpha_arr = jnp.asarray(alpha, dtype=jnp.float32)
    per_class = jnp.sum(out.reshape(-1, c), axis=0)            # (C,)
    return jnp.dot(per_class, alpha_arr) / jnp.float32(n)


def _reference_focal_loss(y_pred, y_true, alpha, gamma):
    alpha = jnp.asarray(alpha, dtype=jnp.float32)
    ce = -y_true * jnp.log(y_pred)
    factor = (jnp.ones_like(y_true) - y_pred) ** gamma
    fl = jnp.matmul(factor * ce, alpha)
    return fl.mean()


if __name__ == "__main__":
    key = jax.random.PRNGKey(0)

    alpha = (0.25, 0.25, 0.25)
    gamma = 2
    C = len(alpha)

    # Small test cases; kwargs force specific tilings so the ragged-tail mask,
    # the partial-last-block path and the uneven-split clamp are all exercised.
    cases = [
        ((2, 250, C), {}),                                # module-like; pad path
        ((4, 512, C), {}),                                # 128-aligned; zero-copy path
        ((10, 128, C), dict(tile_m=8, num_splits=1)),     # partial last block -> mask
        ((24, 128, C), dict(tile_m=8, num_splits=2)),     # uneven split -> clamped block
    ]

    for idx, (shape, kw) in enumerate(cases):
        key, k1, k2 = jax.random.split(key, 3)
        # Valid probabilities (softmax of random logits) so log() is finite.
        logits = jax.random.normal(k1, shape, dtype=jnp.float32)
        y_pred = jax.nn.softmax(logits, axis=-1)
        labels = jax.random.randint(k2, shape[:-1], 0, C)
        y_true = jax.nn.one_hot(labels, C, dtype=jnp.float32)

        loss = focal_loss(y_pred, y_true, alpha=alpha, gamma=gamma, **kw)
        loss = jax.block_until_ready(loss)

        ref = _reference_focal_loss(y_pred.reshape(-1, C), y_true.reshape(-1, C),
                                    alpha, gamma)
        assert jnp.allclose(loss, ref, rtol=1e-5, atol=1e-6), (idx, loss, ref)

    print("KERNEL_OK")
</pallas_src>

<mosaic_0001>
module attributes {stable_mosaic.version = 11 : i64} {
  func.func @_focal_loss_kernel(%arg0: i32, %arg1: i32, %arg2: memref<8x384xf32, #tpu.memory_space<vmem>>, %arg3: memref<8x384xf32, #tpu.memory_space<vmem>>, %arg4: memref<8x384xf32, #tpu.memory_space<vmem>>) attributes {dimension_semantics = [#tpu.dimension_semantics<parallel>, #tpu.dimension_semantics<arbitrary>], iteration_bounds = array<i64: 1, 1>, scalar_prefetch = 0 : i64, scratch_operands = 0 : i64, tpu.core_type = #tpu.core_type<tc>, window_params = [{transform_indices = @transform_0, window_bounds = array<i64: 8, 384>}, {transform_indices = @transform_1, window_bounds = array<i64: 8, 384>}, {transform_indices = @transform_2, window_bounds = array<i64: 8, 384>}]} {
    %c0_i32 = arith.constant 0 : i32
    %0 = arith.cmpi eq, %arg1, %c0_i32 : i32
    %1 = arith.extui %0 : i1 to i32
    %c0_i32_0 = arith.constant 0 : i32
    %2 = arith.cmpi ne, %1, %c0_i32_0 : i32
    scf.if %2 {
      %cst_11 = arith.constant 0.000000e+00 : f32
      %30 = vector.broadcast %cst_11 : f32 to vector<8x384xf32>
      %c0_12 = arith.constant 0 : index
      %c0_13 = arith.constant 0 : index
      %31 = vector.load %arg4[%c0_12, %c0_13] : memref<8x384xf32, #tpu.memory_space<vmem>>, vector<8x384xf32>
      tpu.vector_store %arg4[%c0_12, %c0_13], %30 {strides = array<i32>} : memref<8x384xf32, #tpu.memory_space<vmem>>, vector<8x384xf32>,
    } else {
    }
    %c0 = arith.constant 0 : index
    %c0_1 = arith.constant 0 : index
    %3 = vector.load %arg2[%c0, %c0_1] : memref<8x384xf32, #tpu.memory_space<vmem>>, vector<8x384xf32>
    %c0_2 = arith.constant 0 : index
    %c0_3 = arith.constant 0 : index
    %4 = vector.load %arg3[%c0_2, %c0_3] : memref<8x384xf32, #tpu.memory_space<vmem>>, vector<8x384xf32>
    %cst = arith.constant 0.000000e+00 : f32
    %5 = vector.broadcast %cst : f32 to vector<8x384xf32>
    %6 = arith.subf %5, %4 : vector<8x384xf32>
    %7 = math.log %3 : vector<8x384xf32>
    %8 = arith.mulf %6, %7 : vector<8x384xf32>
    %cst_4 = arith.constant 1.000000e+00 : f32
    %9 = vector.broadcast %cst_4 : f32 to vector<8x384xf32>
    %10 = arith.subf %9, %3 : vector<8x384xf32>
    %11 = arith.mulf %10, %10 : vector<8x384xf32>
    %12 = arith.mulf %11, %8 : vector<8x384xf32>
    %c1_i32 = arith.constant 1 : i32
    %13 = arith.muli %arg0, %c1_i32 : i32
    %14 = arith.addi %13, %arg1 : i32
    %c8_i32 = arith.constant 8 : i32
    %15 = arith.muli %14, %c8_i32 : i32
    %16 = tpu.iota {dimensions = array<i32: 0>} : vector<8x1xi32>
    %17 = vector.broadcast %15 : i32 to vector<8x1xi32>
    %18 = arith.addi %17, %16 : vector<8x1xi32>
    %c4_i32 = arith.constant 4 : i32
    %19 = vector.broadcast %c4_i32 : i32 to vector<8x1xi32>
    %20 = arith.cmpi slt, %18, %19 : vector<8x1xi32>
    %cst_5 = arith.constant 0.000000e+00 : f32
    %21 = vector.shape_cast %20 : vector<8x1xi1> to vector<8x1xi1>
    %22 = vector.broadcast %21 : vector<8x1xi1> to vector<8x384xi1>
    %23 = vector.broadcast %cst_5 : f32 to vector<8x384xf32>
    %24 = arith.select %22, %12, %23 : vector<8x384xi1>, vector<8x384xf32>
    %25 = vector.shape_cast %24 : vector<8x384xf32> to vector<1x8x384xf32>
    %cst_6 = arith.constant dense<0.000000e+00> : vector<8x384xf32>
    %26 = vector.multi_reduction <add>, %25, %cst_6 [0] : vector<1x8x384xf32> to vector<8x384xf32>
    %c0_7 = arith.constant 0 : index
    %c0_8 = arith.constant 0 : index
    %27 = vector.load %arg4[%c0_7, %c0_8] : memref<8x384xf32, #tpu.memory_space<vmem>>, vector<8x384xf32>
    %28 = arith.addf %27, %26 : vector<8x384xf32>
    %c0_9 = arith.constant 0 : index
    %c0_10 = arith.constant 0 : index
    %29 = vector.load %arg4[%c0_9, %c0_10] : memref<8x384xf32, #tpu.memory_space<vmem>>, vector<8x384xf32>
    tpu.vector_store %arg4[%c0_9, %c0_10], %28 {strides = array<i32>} : memref<8x384xf32, #tpu.memory_space<vmem>>, vector<8x384xf32>,
    return
  }
  func.func @transform_0(%arg0: i32, %arg1: i32) -> (i32, i32) {
    %c1_i32 = arith.constant 1 : i32
    %0 = arith.muli %arg0, %c1_i32 : i32
    %1 = arith.addi %0, %arg1 : i32
    %c0_i32 = arith.constant 0 : i32
    %c0_i32_0 = arith.constant 0 : i32
    return %1, %c0_i32 : i32, i32
  }
  func.func @transform_1(%arg0: i32, %arg1: i32) -> (i32, i32) {
    %c1_i32 = arith.constant 1 : i32
    %0 = arith.muli %arg0, %c1_i32 : i32
    %1 = arith.addi %0, %arg1 : i32
    %c0_i32 = arith.constant 0 : i32
    %c0_i32_0 = arith.constant 0 : i32
    return %1, %c0_i32 : i32, i32
  }
  func.func @transform_2(%arg0: i32, %arg1: i32) -> (i32, i32) {
    %c0_i32 = arith.constant 0 : i32
    %c0_i32_0 = arith.constant 0 : i32
    return %arg0, %c0_i32 : i32, i32
  }
}

</mosaic_0001>

<bundles_post_ra>
// kernel: tpu_custom_call.1
= control target key start
LH: loop header
LB: loop body
LE: loop exit
PB: predicated region body
PF: predicated region fallthrough
CT: control target
= control target key end

     0   :  { %7 = vsyncpa [#allocation3], 0  ;;  %s241_s0 = inlined_call_operand.hbm [shape: f32[8,384], index: 0, kind: input, shape index: {}]   ;;  %s242_s1 = inlined_call_operand.hbm [shape: f32[8,384], index: 1, kind: input, shape index: {}]   ;;  %s243_s2 = inlined_call_operand.hbm [shape: f32[8,384], index: 2, kind: output, shape index: {}]  }
   0x1   :  { %8 = vsyncpa [#allocation6], 0 }
   0x2   :  { %9 = vsyncpa [#allocation4], 0  ;;  %s19_s11 = sshll.u32 %s241_s0, 4  ;;  %s214_s12 = smov [#allocation2]   ;;  %s20_s11 = int_to_ptr.hbm [resolvable:$true] %s19_s11 }
   0x3   :  { %s21_s13 = sshll.u32 %s214_s12, 4  ;;  %s34_s16 = sshll.u32 %s242_s1, 4  ;;  %s22_s13 = int_to_ptr.vmem [resolvable:$true] %s21_s13  ;;  %s35_s16 = int_to_ptr.hbm [resolvable:$true] %s34_s16 }
   0x4   :  { %24 = dma.hbm_to_vmem [thread:$0]  %s20_s11, 384, %s22_s13, [#allocation3]  }
   0x5   :  { %s215_s17 = smov [#allocation5]  }
   0x6   :  { %s36_s18 = sshll.u32 %s215_s17, 4  ;;  %s37_s18 = int_to_ptr.vmem [resolvable:$true] %s36_s18 }
   0x7   :  { %39 = dma.hbm_to_vmem [thread:$0]  %s35_s16, 384, %s37_s18, [#allocation6]  }
   0x8   :  { %208 = dma.done.wait [#allocation3], 384  }
   0x9   :  { %209 = vsyncadd [#allocation3], 4294966912 }
   0xa   :  { %210 = dma.done.wait [#allocation6], 384  }
   0xb   :  { %211 = vsyncadd [#allocation6], 4294966912  ;;  %v57_v0 = vld [vmem:[#allocation2] sm:$0xff]  ;;  %v58_v1 = vld [vmem:[#allocation2 + $0x8] sm:$0xff]  ;;  %v86_v4 = vlaneseq  ;;  %s216_s0 = smov [#allocation7]   ;;  %s115_s21 = sshll.u32 %s243_s2, 4  ;;  %s116_s21 = int_to_ptr.hbm [resolvable:$true] %s115_s21 }
   0xc   :  { %130 = vlog2.f32 %v57_v0  ;;  %v59_v2 = vld [vmem:[#allocation2 + $0x10] sm:$0xff]  ;;  %v60_v3 = vld [vmem:[#allocation5] sm:$0xff]  ;;  %v75_v5 = vsub.f32 1.0, %v57_v0  ;;  %v61_v6 = vld [vmem:[#allocation5 + $0x8] sm:$0xff]  ;;  %v76_v7 = vsub.f32 1.0, %v58_v1  ;;  %s113_s1 = sshll.u32 %s216_s0, 4  ;;  %s114_s1 = int_to_ptr.vmem [resolvable:$true] %s113_s1 }
   0xd   :  { %132 = vlog2.f32 %v58_v1  ;;  %v62_v8 = vld [vmem:[#allocation5 + $0x10] sm:$0xff]  ;;  %v63_v9 = vsub.f32 0.0, %v60_v3  ;;  %v77_v10 = vsub.f32 1.0, %v59_v2  ;;  %v87_v12 = vshrl.u32 %v86_v4, 7 }
   0xe   :  { %134 = vlog2.f32 %v59_v2  ;;  %v64_v13 = vsub.f32 0.0, %v61_v6  ;;  %v78_v16 = vmul.f32 %v75_v5, %v75_v5  ;;  %v65_v17 = vsub.f32 0.0, %v62_v8 }
   0xf   :  { %v79_v20 = vmul.f32 %v76_v7, %v76_v7  ;;  %v80_v23 = vmul.f32 %v77_v10, %v77_v10  ;;  %vm90_vm0 = vcmp.lt.s32.totalorder %v87_v12, 4 }
  0x12   :  { %v131_v11 = vpop.eup %130 }
  0x13   :  { %v133_v14 = vpop.eup %132  ;;  %v67_v15 = vmul.f32 0.6931472, %v131_v11 }
  0x14   :  { %v135_v18 = vpop.eup %134  ;;  %v69_v19 = vmul.f32 0.6931472, %v133_v14 }
  0x15   :  { %v72_v21 = vmul.f32 %v67_v15, %v63_v9  ;;  %v71_v22 = vmul.f32 0.6931472, %v135_v18 }
  0x16   :  { %v73_v24 = vmul.f32 %v69_v19, %v64_v13 }
  0x17   :  { %v81_v25 = vmul.f32 %v78_v16, %v72_v21  ;;  %v74_v26 = vmul.f32 %v71_v22, %v65_v17 }
  0x18   :  { %v82_v27 = vmul.f32 %v79_v20, %v73_v24 }
  0x19   :  { %v93_v28 = vsel %vm90_vm0, %v81_v25, 0.0  ;;  %v83_v29 = vmul.f32 %v80_v23, %v74_v26 }
  0x1a   :  { %v94_v30 = vsel %vm90_vm0, %v82_v27, 0.0  ;;  %105 = vst [vmem:[#allocation7] sm:$0xff] %v93_v28 }
  0x1b   :  { %v95_v31 = vsel %vm90_vm0, %v83_v29, 0.0  ;;  %106 = vst [vmem:[#allocation7 + $0x8] sm:$0xff] %v94_v30 }
  0x1c   :  { %107 = vst [vmem:[#allocation7 + $0x10] sm:$0xff] %v95_v31 }
  0x1d   :  { %118 = dma.vmem_to_hbm [thread:$0]  %s114_s1, 384, %s116_s21, [#allocation4]  }
  0x1e   :  { %212 = dma.done.wait [#allocation4], 384  }
  0x1f   :  { %213 = vsyncadd [#allocation4], 4294966912 }
  0x20   :  { %123 = vsyncpa [#allocation3], 1 }
  0x21   :  { %124 = vsyncpa [#allocation6], 1 }
  0x22   :  { %125 = vsyncpa [#allocation4], 1 }

</bundles_post_ra>
